<compile_context>
chip_gen: v6e
topology: v6e:2x2x1
jax: 0.10.0
libtpu: 0.0.40
codegen_flags: <defaults>
</compile_context>

<pallas_src>
import jax
import jax.numpy as jnp
from jax import lax
from jax.experimental import pallas as pl
from jax.experimental.pallas import tpu as pltpu


# ----------------------------------------------------------------------------
# Fused kernel (one grid step per batch block):
#   spatial mean -> linear -> softmax -> weighted sum over the prompt output bank
# ----------------------------------------------------------------------------
def _fused_kernel(x_ref, wl_ref, bl_ref, obank_ref, out_ref):
    # x_ref     : (Bt, C, H*W)   input features (channels on sublanes, pixels on lanes)
    # wl_ref    : (C, L)         linear weight
    # bl_ref    : (1, L)         linear bias
    # obank_ref : (L, D, H*W)    precomputed conv3x3(bilinear(prompt_param[l]))
    # out_ref   : (Bt, D, H*W)   NCHW-flattened output block
    Bt, D, HW = out_ref.shape
    L = obank_ref.shape[0]

    # --- prompt weights: mean over pixels -> linear -> softmax (stays in registers) ---
    emb = jnp.mean(x_ref[...], axis=2)                                    # (Bt, C)
    logits = jnp.dot(emb, wl_ref[...],
                     preferred_element_type=jnp.float32) + bl_ref[...]    # (Bt, L)
    m = jnp.max(logits, axis=-1, keepdims=True)
    e = jnp.exp(logits - m)
    wvec = e / jnp.sum(e, axis=-1, keepdims=True)                         # (Bt, L)

    # --- weighted sum over the prompt output bank: pure VPU FMAs ---
    # Each obank[l] slab is lane-dense (D, H*W); the store is a full-lane vst.
    for b in range(Bt):
        acc = jnp.zeros((D, HW), jnp.float32)
        for l in range(L):
            acc = acc + wvec[b:b + 1, l:l + 1] * obank_ref[l]             # (D, H*W)
        out_ref[b] = acc.astype(out_ref.dtype)


# ----------------------------------------------------------------------------
# Init-time precompute: fold bilinear upsample + 3x3 conv into a per-prompt bank
# ----------------------------------------------------------------------------
def _bilinear_matrix(out_size, in_size):
    # Matches F.interpolate(mode='bilinear', align_corners=False).
    scale = in_size / out_size
    dst = jnp.arange(out_size, dtype=jnp.float32)
    src = jnp.maximum((dst + 0.5) * scale - 0.5, 0.0)
    i0 = jnp.minimum(jnp.floor(src).astype(jnp.int32), in_size - 1)
    i1 = jnp.minimum(i0 + 1, in_size - 1)
    w1 = src - i0.astype(jnp.float32)
    w0 = 1.0 - w1
    M = (jax.nn.one_hot(i0, in_size, dtype=jnp.float32) * w0[:, None] +
         jax.nn.one_hot(i1, in_size, dtype=jnp.float32) * w1[:, None])
    return M                                                              # (out, in)


def precompute_operands(params, H, W):
    """Build kernel operands once (parameter + output-resolution derived)."""
    prompt = params["prompt_param"]                       # (1, L, D, S, S)
    _, L, D, S, _ = prompt.shape
    P = prompt[0]                                         # (L, D, S, S)

    Mh = _bilinear_matrix(H, S)                           # (H, S)
    Mw = _bilinear_matrix(W, S)                           # (W, S)

    hp = lax.Precision.HIGHEST
    # Per-prompt bilinear upsample, then per-prompt SAME 3x3 conv (L as batch dim).
    up = jnp.einsum('hi,wj,ldij->ldhw', Mh, Mw, P, precision=hp)          # (L, D, H, W)
    obank = lax.conv_general_dilated(
        up, params["conv_w"], window_strides=(1, 1), padding='SAME',
        dimension_numbers=('NCHW', 'OIHW', 'NCHW'), precision=hp)         # (L, D, H, W)

    return dict(obank=obank.reshape(L, D, H * W),
                lin_w=params["lin_w"],
                lin_b=params["lin_b"].reshape(1, -1),
                D=int(D), L=int(L))


# ----------------------------------------------------------------------------
# Forward wrapper (NCHW in, NCHW out)
# ----------------------------------------------------------------------------
def prompt_gen_forward(x_nchw, ops):
    B, C, H, W = x_nchw.shape
    D, L = ops["D"], ops["L"]
    HW = H * W
    x_flat = x_nchw.reshape(B, C, HW)                     # free reshape, no transpose

    # grid of length 2 when possible: one balanced block per v7x TensorCore;
    # on single-TC v5e/v6e this is only 2 short serial steps (batch folded into block).
    G = 2 if (B % 2 == 0 and B >= 2) else 1
    Bt = B // G

    out = pl.pallas_call(
        _fused_kernel,
        out_shape=jax.ShapeDtypeStruct((B, D, HW), jnp.float32),
        grid=(G,),
        in_specs=[
            pl.BlockSpec((Bt, C, HW), lambda b: (b, 0, 0)),
            pl.BlockSpec((C, L), lambda b: (0, 0)),
            pl.BlockSpec((1, L), lambda b: (0, 0)),
            pl.BlockSpec((L, D, HW), lambda b: (0, 0, 0)),
        ],
        out_specs=pl.BlockSpec((Bt, D, HW), lambda b: (b, 0, 0)),
        compiler_params=pltpu.CompilerParams(
            dimension_semantics=("parallel",),            # v7x: one block per TensorCore
            vmem_limit_bytes=32 * 1024 * 1024,
        ),
    )(x_flat, ops["lin_w"], ops["lin_b"], ops["obank"])

    # (B, D, H*W) is already NCHW-flattened -> free reshape, no post-kernel transpose.
    return out.reshape(B, D, H, W)


# ----------------------------------------------------------------------------
# Parameter init (matches the PyTorch module's parameter shapes)
# ----------------------------------------------------------------------------
def init_params(key, prompt_dim, prompt_len, prompt_size, lin_dim):
    k1, k2, k3, k4 = jax.random.split(key, 4)
    prompt_param = jax.random.uniform(
        k1, (1, prompt_len, prompt_dim, prompt_size, prompt_size), jnp.float32)
    bound = 1.0 / (lin_dim ** 0.5)
    lin_w = jax.random.uniform(k2, (lin_dim, prompt_len), jnp.float32, -bound, bound)
    lin_b = jax.random.uniform(k3, (prompt_len,), jnp.float32, -bound, bound)
    cbound = (6.0 / (prompt_dim * 9)) ** 0.5
    conv_w = jax.random.uniform(
        k4, (prompt_dim, prompt_dim, 3, 3), jnp.float32, -cbound, cbound)  # (Cout,Cin,kH,kW)
    return dict(prompt_param=prompt_param, lin_w=lin_w, lin_b=lin_b, conv_w=conv_w)


# ----------------------------------------------------------------------------
# Pure-JAX reference (for correctness check)
# ----------------------------------------------------------------------------
def reference_forward(x, params, Mh, Mw):
    hp = lax.Precision.HIGHEST
    emb = x.mean(axis=(2, 3))
    logits = jnp.dot(emb, params["lin_w"], precision=hp) + params["lin_b"]
    wts = jax.nn.softmax(logits, axis=1)                  # (B, L)
    P = params["prompt_param"][0]                         # (L, D, S, S)
    prompt = jnp.einsum('bl,ldij->bdij', wts, P, precision=hp)
    up = jnp.einsum('hi,wj,bdij->bdhw', Mh, Mw, prompt, precision=hp)
    out = lax.conv_general_dilated(
        up, params["conv_w"], window_strides=(1, 1), padding='SAME',
        dimension_numbers=('NCHW', 'OIHW', 'NCHW'), precision=hp)
    return out


if __name__ == "__main__":
    # Small shapes consistent with the module's forward (lin_dim == C).
    B, C, H, W = 2, 16, 16, 16
    prompt_dim, prompt_len, prompt_size = 8, 5, 8          # H*W = 256 lanes (lane-dense)

    key = jax.random.PRNGKey(0)
    kx, kp = jax.random.split(key)
    params = init_params(kp, prompt_dim, prompt_len, prompt_size, C)
    x = jax.random.normal(kx, (B, C, H, W), jnp.float32)

    ops = precompute_operands(params, H, W)                # once, at "init" time
    out = prompt_gen_forward(x, ops)
    out = jax.block_until_ready(out)
    assert out.shape == (B, prompt_dim, H, W), out.shape

    Mh = _bilinear_matrix(H, prompt_size)
    Mw = _bilinear_matrix(W, prompt_size)
    ref = reference_forward(x, params, Mh, Mw)
    err = float(jnp.max(jnp.abs(out - ref)))
    assert jnp.allclose(out, ref, rtol=2e-4, atol=2e-4), err

    print("KERNEL_OK")
</pallas_src>

<mosaic_0001>
module attributes {stable_mosaic.version = 11 : i64} {
  func.func @_fused_kernel(%arg0: i32, %arg1: memref<1x16x256xf32, #tpu.memory_space<vmem>>, %arg2: memref<16x5xf32, #tpu.memory_space<vmem>>, %arg3: memref<1x5xf32, #tpu.memory_space<vmem>>, %arg4: memref<5x8x256xf32, #tpu.memory_space<vmem>>, %arg5: memref<1x8x256xf32, #tpu.memory_space<vmem>>) attributes {dimension_semantics = [#tpu.dimension_semantics<parallel>], iteration_bounds = array<i64: 2>, scalar_prefetch = 0 : i64, scratch_operands = 0 : i64, tpu.core_type = #tpu.core_type<tc>, window_params = [{transform_indices = @transform_0, window_bounds = array<i64: 1, 16, 256>}, {pipeline_mode = #tpu.pipeline_mode<synchronous>, transform_indices = @transform_1, window_bounds = array<i64: 16, 5>}, {pipeline_mode = #tpu.pipeline_mode<synchronous>, transform_indices = @transform_2, window_bounds = array<i64: 1, 5>}, {pipeline_mode = #tpu.pipeline_mode<synchronous>, transform_indices = @transform_3, window_bounds = array<i64: 5, 8, 256>}, {transform_indices = @transform_4, window_bounds = array<i64: 1, 8, 256>}]} {
    %c0 = arith.constant 0 : index
    %c0_0 = arith.constant 0 : index
    %c0_1 = arith.constant 0 : index
    %0 = vector.load %arg1[%c0, %c0_0, %c0_1] : memref<1x16x256xf32, #tpu.memory_space<vmem>>, vector<1x16x256xf32>
    %cst = arith.constant dense<0.000000e+00> : vector<1x16xf32>
    %1 = vector.multi_reduction <add>, %0, %cst [2] : vector<1x16x256xf32> to vector<1x16xf32>
    %cst_2 = arith.constant 2.560000e+02 : f32
    %2 = vector.broadcast %cst_2 : f32 to vector<1x16xf32>
    %3 = arith.divf %1, %2 : vector<1x16xf32>
    %c0_3 = arith.constant 0 : index
    %c0_4 = arith.constant 0 : index
    %4 = vector.load %arg2[%c0_3, %c0_4] : memref<16x5xf32, #tpu.memory_space<vmem>>, vector<16x5xf32>
    %cst_5 = arith.constant dense<0.000000e+00> : vector<1x5xf32>
    %5 = tpu.matmul %3, %4, %cst_5 {dimension_numbers = #tpu.dot_dimension_numbers<[1], [0], [0], [1], [0, 0, 1, 1], [], []>} : vector<1x16xf32>, vector<16x5xf32>, vector<1x5xf32> -> vector<1x5xf32>
    %c0_6 = arith.constant 0 : index
    %c0_7 = arith.constant 0 : index
    %6 = vector.load %arg3[%c0_6, %c0_7] : memref<1x5xf32, #tpu.memory_space<vmem>>, vector<1x5xf32>
    %7 = arith.addf %5, %6 : vector<1x5xf32>
    %cst_8 = arith.constant dense<0xFF800000> : vector<1xf32>
    %8 = vector.multi_reduction <maximumf>, %7, %cst_8 [1] : vector<1x5xf32> to vector<1xf32>
    %9 = vector.shape_cast %8 : vector<1xf32> to vector<1x1xf32>
    %10 = vector.broadcast %9 : vector<1x1xf32> to vector<1x5xf32>
    %11 = arith.subf %7, %10 : vector<1x5xf32>
    %12 = math.exp %11 : vector<1x5xf32>
    %cst_9 = arith.constant dense<0.000000e+00> : vector<1xf32>
    %13 = vector.multi_reduction <add>, %12, %cst_9 [1] : vector<1x5xf32> to vector<1xf32>
    %14 = vector.shape_cast %13 : vector<1xf32> to vector<1x1xf32>
    %15 = vector.broadcast %14 : vector<1x1xf32> to vector<1x5xf32>
    %16 = arith.divf %12, %15 : vector<1x5xf32>
    %cst_10 = arith.constant 0.000000e+00 : f32
    %17 = vector.broadcast %cst_10 : f32 to vector<8x256xf32>
    %18 = vector.extract_strided_slice %16 {offsets = [0, 0], sizes = [1, 1], strides = [1, 1]} : vector<1x5xf32> to vector<1x1xf32>
    %c0_11 = arith.constant 0 : index
    %c0_12 = arith.constant 0 : index
    %c0_13 = arith.constant 0 : index
    %19 = vector.load %arg4[%c0_11, %c0_12, %c0_13] : memref<5x8x256xf32, #tpu.memory_space<vmem>>, vector<1x8x256xf32>
    %20 = vector.shape_cast %19 : vector<1x8x256xf32> to vector<8x256xf32>
    %21 = vector.broadcast %18 : vector<1x1xf32> to vector<8x256xf32>
    %22 = arith.mulf %21, %20 : vector<8x256xf32>
    %23 = arith.addf %17, %22 : vector<8x256xf32>
    %24 = vector.extract_strided_slice %16 {offsets = [0, 1], sizes = [1, 1], strides = [1, 1]} : vector<1x5xf32> to vector<1x1xf32>
    %c1 = arith.constant 1 : index
    %c0_14 = arith.constant 0 : index
    %c0_15 = arith.constant 0 : index
    %25 = vector.load %arg4[%c1, %c0_14, %c0_15] : memref<5x8x256xf32, #tpu.memory_space<vmem>>, vector<1x8x256xf32>
    %26 = vector.shape_cast %25 : vector<1x8x256xf32> to vector<8x256xf32>
    %27 = vector.broadcast %24 : vector<1x1xf32> to vector<8x256xf32>
    %28 = arith.mulf %27, %26 : vector<8x256xf32>
    %29 = arith.addf %23, %28 : vector<8x256xf32>
    %30 = vector.extract_strided_slice %16 {offsets = [0, 2], sizes = [1, 1], strides = [1, 1]} : vector<1x5xf32> to vector<1x1xf32>
    %c2 = arith.constant 2 : index
    %c0_16 = arith.constant 0 : index
    %c0_17 = arith.constant 0 : index
    %31 = vector.load %arg4[%c2, %c0_16, %c0_17] : memref<5x8x256xf32, #tpu.memory_space<vmem>>, vector<1x8x256xf32>
    %32 = vector.shape_cast %31 : vector<1x8x256xf32> to vector<8x256xf32>
    %33 = vector.broadcast %30 : vector<1x1xf32> to vector<8x256xf32>
    %34 = arith.mulf %33, %32 : vector<8x256xf32>
    %35 = arith.addf %29, %34 : vector<8x256xf32>
    %36 = vector.extract_strided_slice %16 {offsets = [0, 3], sizes = [1, 1], strides = [1, 1]} : vector<1x5xf32> to vector<1x1xf32>
    %c3 = arith.constant 3 : index
    %c0_18 = arith.constant 0 : index
    %c0_19 = arith.constant 0 : index
    %37 = vector.load %arg4[%c3, %c0_18, %c0_19] : memref<5x8x256xf32, #tpu.memory_space<vmem>>, vector<1x8x256xf32>
    %38 = vector.shape_cast %37 : vector<1x8x256xf32> to vector<8x256xf32>
    %39 = vector.broadcast %36 : vector<1x1xf32> to vector<8x256xf32>
    %40 = arith.mulf %39, %38 : vector<8x256xf32>
    %41 = arith.addf %35, %40 : vector<8x256xf32>
    %42 = vector.extract_strided_slice %16 {offsets = [0, 4], sizes = [1, 1], strides = [1, 1]} : vector<1x5xf32> to vector<1x1xf32>
    %c4 = arith.constant 4 : index
    %c0_20 = arith.constant 0 : index
    %c0_21 = arith.constant 0 : index
    %43 = vector.load %arg4[%c4, %c0_20, %c0_21] : memref<5x8x256xf32, #tpu.memory_space<vmem>>, vector<1x8x256xf32>
    %44 = vector.shape_cast %43 : vector<1x8x256xf32> to vector<8x256xf32>
    %45 = vector.broadcast %42 : vector<1x1xf32> to vector<8x256xf32>
    %46 = arith.mulf %45, %44 : vector<8x256xf32>
    %47 = arith.addf %41, %46 : vector<8x256xf32>
    %c0_22 = arith.constant 0 : index
    %c0_23 = arith.constant 0 : index
    %c0_24 = arith.constant 0 : index
    %48 = vector.load %arg5[%c0_22, %c0_23, %c0_24] : memref<1x8x256xf32, #tpu.memory_space<vmem>>, vector<1x8x256xf32>
    %49 = vector.shape_cast %48 : vector<1x8x256xf32> to vector<8x256xf32>
    %50 = vector.shape_cast %47 : vector<8x256xf32> to vector<1x8x256xf32>
    tpu.vector_store %arg5[%c0_22, %c0_23, %c0_24], %50 {strides = array<i32>} : memref<1x8x256xf32, #tpu.memory_space<vmem>>, vector<1x8x256xf32>,
    return
  }
  func.func @transform_0(%arg0: i32) -> (i32, i32, i32) {
    %c0_i32 = arith.constant 0 : i32
    %c0_i32_0 = arith.constant 0 : i32
    %c0_i32_1 = arith.constant 0 : i32
    return %arg0, %c0_i32, %c0_i32_0 : i32, i32, i32
  }
  func.func @transform_1(%arg0: i32) -> (i32, i32) {
    %c0_i32 = arith.constant 0 : i32
    %c0_i32_0 = arith.constant 0 : i32
    %c0_i32_1 = arith.constant 0 : i32
    return %c0_i32, %c0_i32_0 : i32, i32
  }
  func.func @transform_2(%arg0: i32) -> (i32, i32) {
    %c0_i32 = arith.constant 0 : i32
    %c0_i32_0 = arith.constant 0 : i32
    %c0_i32_1 = arith.constant 0 : i32
    return %c0_i32, %c0_i32_0 : i32, i32
  }
  func.func @transform_3(%arg0: i32) -> (i32, i32, i32) {
    %c0_i32 = arith.constant 0 : i32
    %c0_i32_0 = arith.constant 0 : i32
    %c0_i32_1 = arith.constant 0 : i32
    %c0_i32_2 = arith.constant 0 : i32
    return %c0_i32, %c0_i32_0, %c0_i32_1 : i32, i32, i32
  }
  func.func @transform_4(%arg0: i32) -> (i32, i32, i32) {
    %c0_i32 = arith.constant 0 : i32
    %c0_i32_0 = arith.constant 0 : i32
    %c0_i32_1 = arith.constant 0 : i32
    return %arg0, %c0_i32, %c0_i32_0 : i32, i32, i32
  }
}

</mosaic_0001>

<bundles_post_ra>
// kernel: tpu_custom_call.1
= control target key start
LH: loop header
LB: loop body
LE: loop exit
PB: predicated region body
PF: predicated region fallthrough
CT: control target
= control target key end

     0   :  { %9 = vsyncpa [#allocation3], 0  ;;  %s955_s0 = inlined_call_operand.hbm [shape: f32[2,16,256], index: 0, kind: input, shape index: {}]   ;;  %s956_s1 = inlined_call_operand.vmem [shape: f32[16,5], index: 1, kind: input, shape index: {}]   ;;  %s957_s2 = inlined_call_operand.vmem [shape: f32[1,5], index: 2, kind: input, shape index: {}]   ;;  %s958_s3 = inlined_call_operand.hbm [shape: f32[5,8,256], index: 3, kind: input, shape index: {}]   ;;  %s959_s4 = inlined_call_operand.hbm [shape: f32[2,8,256], index: 4, kind: output, shape index: {}]  }
   0x1   :  { %11 = vsyncpa [#allocation3 + $0x1], 0 }
   0x2   :  { %12 = vsyncpa [#allocation6], 0 }
   0x3   :  { %13 = vsyncpa [#allocation4], 0 }
   0x4   :  { %15 = vsyncpa [#allocation4 + $0x1], 0  ;;  %s770_s15 = smov 0   ;;  %s772_s16 = smov 0  }
   0x5   :  { %s774_s17 = smov 0   ;;  %s776_s18 = smov 0  }
   0x6 LB: > { %s791_s19 = sadd.s32 4294967295, %s732_s18   ;;  %s502_s20 = sadd.s32 4294967294, %s732_s18   ;;  %s732_s18 = sphi %s776_s18, %s981_s18   ;;  %s728_s17 = sphi %s774_s17, %s980_s17   ;;  %s724_s16 = sphi %s772_s16, %s979_s16   ;;  %s720_s15 = sphi %s770_s15, %s978_s15  }
   0x7   : > { %p41_p0 = scmp.ne.s32.totalorder %s724_s16, %s720_s15  ;;  %p960_p1 = scmp.eq.s32.totalorder %s791_s19, 0 }
   0x8   : > { %p134_p3 = scmp.eq.s32.totalorder %s502_s20, 1  ;;  %p503_p5 = scmp.ge.s32.totalorder %s732_s18, 1 }
   0x9   : > { %p800_p4 = por %p960_p1, %p41_p0  ;;  %p141_p7 = scmp.lt.s32.totalorder %s732_s18, 3 }
   0xa   : > { %p805_p6 = por %p134_p3, %p41_p0  ;;  %s734_s24 = smov [#allocation5]  }
   0xb   : > { %s964_s21 = scalar_select %p800_p4, 1, 0 }
   0xc   : > { %s965_s22 = scalar_select %p805_p6, 1, 0 }
   0xd   : > { %p810_p8 = pnand %p503_p5, %p141_p7  ;;  %s159_s25 = sshll.u32 %s734_s24, 4  ;;  %s160_s25 = int_to_ptr.vmem [resolvable:$true] %s159_s25 }
   0xe   : > { %s824_s27 = sadd.s32 1, %s732_s18   ;;  %s28_s28 = sadd.s32 1, %s728_s17 }
   0xf   : > { %s966_s23 = scalar_select %p810_p8, 1, 0 }
  0x10   : > { %p549_p9 = pneg %p810_p8  ;;  %s25_s29 = ssub.s32 %s732_s18, %s824_s27 }
  0x11   : > { %s621_s30 = scalar_lea.vmem %s160_s25, 1280  ;;  %p629_p5 = scmp.lt.s32.totalorder %s160_s25, %s160_s25 }
  0x12   : > { %p819_p11 = pnand %p549_p9, %p960_p1  ;;  %p622_p13 = scmp.ne.s32.totalorder %s160_s25, %s621_s30 }
  0x13   : > { %p630_p7 = scmp.lt.s32.totalorder %s621_s30, %s621_s30 }
  0x14   : > { %p612_p12 = pneg %p819_p11 }
  0x15   : > { %p631_p10 = por %p630_p7, %p629_p5 }
  0x16   : > { %p624_p0 = pnand %p622_p13, %p612_p12 }
  0x18   : > { %p625_p3 = pneg %p624_p0 }
  0x1a   : > { %p632_p2 = pnand %p631_p10, %p625_p3 }
  0x1c   : > { %635 = shalt.err (!%p632_p2)
}
  0x1d   : > { %s735_s5 = smov 256   ;;  %s736_s6 = smov 16  }
  0x1e   : > { %552 = dma.hbm_to_vmem [thread:$0]  (!%p819_p11), %s958_s3, 1280, %s160_s25, [#allocation6], %s735_s5, %s735_s5, %s736_s6  }
  0x1f   : > { %p26_p2 = scmp.eq.s32.totalorder %s25_s29, 0  ;;  %p35_p9 = scmp.ne.s32.totalorder %s728_s17, %s724_s16 }
  0x20   : > { %p36_p10 = scmp.eq.s32.totalorder %s732_s18, 0  ;;  %p562_p12 = scmp.lt.s32.totalorder %s732_s18, 2 }
  0x21   : > { %s844_s9 = scalar_select %p26_p2, %s728_s17, %s28_s28  }
  0x22   : > { %p37_p13 = por %p36_p10, %p35_p9  ;;  %p968_p0 = scmp.eq.s32.totalorder %s791_s19, 1 }
  0x23   : > { %s173_s11 = sand.u32 1, %s728_s17   ;;  %s519_s12 = sshll.u32 %s732_s18, 9 }
  0x24   : > { %p848_p3 = por %p968_p0, %p35_p9  ;;  %s506_s13 = sshll.u32 %s173_s11, 5 }
  0x25   : > { %s857_s24 = scalar_lea.hbm %s955_s0, %s519_s12  ;;  %s177_s25 = scalar_lea.vmem [#allocation2], %s506_s13 }
  0x26   : > { %s969_s10 = scalar_select %p848_p3, 1, 0 }
  0x27   : > { %s184_s26 = sshll.u32 %s177_s25, 4  ;;  %p859_p11 = pnand %p562_p12, %p37_p13  ;;  %s863_s26 = int_to_ptr.vmem [resolvable:$true] %s184_s26 }
  0x28   : > { %s865_s29 = scalar_lea.sflag [#allocation3], %s173_s11  ;;  %s636_s30 = scalar_lea.hbm %s857_s24, 512 }
  0x29   : > { %p637_p5 = scmp.ne.s32.totalorder %s857_s24, %s636_s30  ;;  %p638_p7 = pneg %p859_p11 }
  0x2a   : > { %s641_s12 = scalar_lea.hbm %s955_s0, 1024  ;;  %p642_p10 = scmp.lt.s32.totalorder %s857_s24, %s955_s0 }
  0x2b   : > { %p639_p2 = pnand %p638_p7, %p637_p5  ;;  %p643_p12 = scmp.lt.s32.totalorder %s641_s12, %s636_s30 }
  0x2d   : > { %p640_p9 = pneg %p639_p2  ;;  %p644_p13 = por %p643_p12, %p642_p10 }
  0x2f   : > { %p645_p0 = pnand %p644_p13, %p640_p9 }
  0x31   : > { %648 = shalt.err (!%p645_p0)
}
  0x32   : > { %s649_s11 = scalar_lea.vmem %s863_s26, 512  ;;  %s737_s20 = smov [#allocation2]  }
  0x33   : > { %p650_p1 = scmp.ne.s32.totalorder %s863_s26, %s649_s11  ;;  %s654_s25 = sshll.u32 %s737_s20, 4  ;;  %s655_s25 = int_to_ptr.vmem [resolvable:$false] %s654_s25 }
  0x34   : > { %s656_s7 = scalar_lea.vmem %s655_s25, 1024  ;;  %p657_p2 = scmp.lt.s32.totalorder %s863_s26, %s655_s25 }
  0x35   : > { %p652_p6 = pnand %p650_p1, %p638_p7  ;;  %p658_p3 = scmp.lt.s32.totalorder %s656_s7, %s649_s11 }
  0x37   : > { %p653_p5 = pneg %p652_p6  ;;  %p659_p4 = por %p658_p3, %p657_p2 }
  0x39   : > { %p660_p8 = pnand %p659_p4, %p653_p5 }
  0x3b   : > { %663 = shalt.err (!%p660_p8)
}
  0x3c   : > { %556 = dma.hbm_to_vmem [thread:$0]  (!%p859_p11), %s857_s24, 512, %s863_s26, %s865_s29, %s735_s5, %s735_s5, %s736_s6  }
  0x3d   : > { %p971_p1 = scmp.ne.s32.totalorder %s966_s23, 0 }
  0x3e   : > { %s892_s30 = sand.u32 (!%p971_p1), 1, %s724_s16   ;;  %p972_p4 = scmp.ne.s32.totalorder (!%p971_p1), %s964_s21, 0 }
  0x3f   : > { %196 = sbr.rel (%p971_p1) target bundleno = 920 (0x398), region = 36  ;;  %s510_s8 = sshll.u32 (!%p971_p1), %s892_s30, 5 }
  0x40   : > { %s199_s12 = scalar_lea.sflag (!%p971_p1), [#allocation3], %s892_s30  ;;  %s202_s13 = scalar_lea.vmem (!%p971_p1), [#allocation2], %s510_s8 }
  0x44   : > { %707 = dma.done.wait (%p972_p4), %s199_s12, 512  }
  0x45   : > { %709 = vsyncadd (%p972_p4), %s199_s12, 4294966784  ;;  %p973_p6 = scmp.eq.s32.totalorder %s791_s19, 0 }
  0x47   : > { %711 = dma.done.wait (%p973_p6), [#allocation6], 1280   ;;  %p974_p8 = pmov %p973_p6 }
  0x48   : > { %v231_v0 = vld [vmem:[%s202_s13] sm:$0xff]  ;;  %v232_v1 = vld [vmem:[%s202_s13 + $0x8] sm:$0xff]  ;;  %v233_v2 = vld [vmem:[%s202_s13 + $0x10] sm:$0xff]  ;;  %v738_v6 = vmov 0.0   ;;  %vm739_vm0 = vmmov 0   ;;  %v249_v9 = vlaneseq  ;;  %vm260_vm1 = vcmask 130112  }
  0x49   : > { %713 = vsyncadd (%p974_p8), [#allocation6], 4294966016  ;;  %v235_v3 = vadd.f32 %v232_v1, %v231_v0  ;;  %v234_v4 = vld [vmem:[%s202_s13 + $0x18] sm:$0xff]  ;;  %524 = vmatprep.subr.mxu0 %v738_v6  ;;  %v245_v7 = vld [vmem:[%s956_s1 + $0x8] sm:$0xff]  ;;  %528 = vmatprep.mubr.msk.f32.mxu0 %vm739_vm0, %v738_v6  ;;  %vm262_vm2 = vcmask 130048   ;;  %vm335_vm3 = vcmask 32768  }
  0x4a   : > { %v238_v5 = vadd.f32 %v234_v4, %v233_v2  ;;  %525 = vmatpush3.msra.mxu0 %v245_v7  ;;  %v244_v8 = vld [vmem:[%s956_s1] sm:$0xff]  ;;  %v250_v10 = vand.u32 127, %v249_v9  ;;  %v252_v11 = vshrl.u32 %v249_v9, 7  ;;  %s740_s28 = smov 126   ;;  %s741_s29 = smov 127   ;;  %v348_v41 = vld [vmem:[#allocation5 + $0x8] sm:$0xff] }
  0x4b   : > { %236 = vadd.xlane.f32.xlu0 %v235_v3  ;;  %526 = vmatprep.subr.mxu0 %v738_v6  ;;  %v246_v22 = vld [vmem:[%s957_s2] sm:$0x1]  ;;  %s742_s14 = smov 125   ;;  %s743_s11 = smov 124   ;;  %v358_v42 = vld [vmem:[#allocation5 + $0x10] sm:$0xff]  ;;  %v359_v43 = vld [vmem:[#allocation5 + $0x18] sm:$0xff] }
  0x4c   : > { %527 = vmatpush3.msra.mxu0 %v244_v8  ;;  %v255_v12 = vadd.s32 4294967288, %v250_v10  ;;  %v253_v14 = vsub.s32 %v250_v10, %v252_v11  ;;  %v347_v39 = vld [vmem:[#allocation5] sm:$0xff]  ;;  %v371_v47 = vld [vmem:[#allocation5 + $0x28] sm:$0xff]  ;;  %v382_v52 = vld [vmem:[#allocation5 + $0x30] sm:$0xff]  ;;  %s512_s8 = sshll.u32 %s892_s30, 4  ;;  %s520_s23 = sshll.u32 %s791_s19, 8 }
  0x4d   : > { %v370_v46 = vld [vmem:[#allocation5 + $0x20] sm:$0xff]  ;;  %v383_v53 = vld [vmem:[#allocation5 + $0x38] sm:$0xff]  ;;  %v395_v0 = vld [vmem:[#allocation5 + $0x48] sm:$0xff]  ;;  %s230_s5 = scalar_lea.vmem [#allocation7], %s512_s8  ;;  %s918_s26 = scalar_lea.hbm %s959_s4, %s520_s23 }
  0x4e   : > { %v258_v16 = vsub.s32 %v255_v12, %v252_v11  ;;  %v394_v63 = vld [vmem:[#allocation5 + $0x40] sm:$0xff]  ;;  %s422_s21 = sshll.u32 %s230_s5, 4  ;;  %p975_p11 = scmp.ne.s32.totalorder %s969_s10, 0  ;;  %s423_s21 = int_to_ptr.vmem [resolvable:$true] %s422_s21 }
  0x4f   : > { %239 = vadd.xlane.f32.xlu0 %v238_v5  ;;  %s744_s19 = smov [#allocation7]  }
  0xd4   : > { %v237_v13 = vpop.xlane.xlu0 %236 }
  0xd5   : > { %v242_v15 = vmul.f32 0.00390625, %v237_v13 }
  0xd7   : > { %v254_v19 = vrot.slane %v242_v15, %v253_v14 }
  0xd8   : > { %v240_v17 = vpop.xlane.xlu0 %239 }
  0xd9   : > { %v243_v18 = vmul.f32 0.00390625, %v240_v17 }
  0xdb   : > { %v259_v20 = vrot.slane %v243_v18, %v258_v16 }
  0xdd   : > { %v261_v21 = vsel %vm260_vm1, %v259_v20, %v254_v19 }
  0xde   : > { %529 = vmatmul.mubr.msk.f32.vlgmr.msra.gmra.mxu0 %vm262_vm2, %v261_v21 }
 0x19e   : > { %v331_v23 = vpop.f32.mrf.mxu0 }
 0x19f   : > { %v332_v24 = vadd.f32 %v331_v23, %v246_v22 }
 0x1a0   : > { %v530_v25 = vpop.f32.mrf.mxu0 }
 0x1a1   : > { %v336_v26 = vsel %vm335_vm3, %v332_v24, -inf }
 0x1a2   : > { %337 = vmax.xlane.f32.xlu1 %v336_v26 }
 0x22b   : > { %v338_v27 = vpop.xlane.xlu1 %337 }
 0x22c   : > { %v339_v28 = vsub.f32 %v332_v24, %v338_v27 }
 0x22e   : > { %v340_v29 = vmul.f32 1.442695, %v339_v28 }
 0x230   : > { %606 = vpow2.f32 %v340_v29 }
 0x23d   : > { %v607_v30 = vpop.eup %606 }
 0x23e   : > { %v342_v31 = vsel %vm335_vm3, %v607_v30, 0.0 }
 0x23f   : > { %343 = vadd.xlane.f32.xlu1 %v342_v31 }
 0x2c8   : > { %v344_v32 = vpop.xlane.xlu1 %343 }
 0x2c9   : > { %608 = vrcp.f32 %v344_v32 }
 0x2d6   : > { %v609_v33 = vpop.eup %608 }
 0x2d7   : > { %v346_v34 = vmul.f32 %v609_v33, %v607_v30 }
 0x2d9   : > { %372 = vrot.lane.b32.xlu1 %v346_v34, %s740_s28  ;;  %360 = vrot.lane.b32.xlu0 %v346_v34, %s741_s29  ;;  %531 = vpush %v346_v34  ;;  %s408_s28 = scalar_lea.sflag [#allocation4], %s892_s30  ;;  %s664_s29 = scalar_lea.vmem %s423_s21, 256 }
 0x2da   : > { %p665_p3 = scmp.ne.s32.totalorder %s423_s21, %s664_s29 }
 0x2dc   : > { %p666_p7 = pnand %p665_p3, %p975_p11 }
 0x2dd   : > { %384 = vrot.lane.b32.xlu1 %v346_v34, %s742_s14  ;;  %s668_s14 = sshll.u32 %s744_s19, 4  ;;  %s669_s14 = int_to_ptr.vmem [resolvable:$false] %s668_s14 }
 0x2de   : > { %p667_p9 = pneg %p666_p7  ;;  %p671_p10 = scmp.lt.s32.totalorder %s423_s21, %s669_s14 }
 0x2e1   : > { %396 = vrot.lane.b32.xlu1 %v346_v34, %s743_s11  ;;  %s670_s11 = scalar_lea.vmem %s669_s14, 512 }
 0x2e2   : > { %p672_p12 = scmp.lt.s32.totalorder %s670_s11, %s664_s29 }
 0x2e4   : > { %p673_p13 = por %p672_p12, %p671_p10 }
 0x2e6   : > { %p674_p0 = pnand %p673_p13, %p667_p9 }
 0x30a   : > { %s532_s20 = spop %531 }
 0x30b   : > { %v351_v40 = vstv %s532_s20 }
 0x30c   : > { %v353_v44 = vmul.f32 %v351_v40, %v347_v39  ;;  %v354_v48 = vmul.f32 %v351_v40, %v348_v41 }
 0x34b   : > { %v373_v35 = vpop.permute.xlu1 %372  ;;  %v361_v36 = vpop.permute.xlu0 %360 }
 0x34c   : > { %533 = vpush %v361_v36 }
 0x34d   : > { %535 = vpush %v373_v35 }
 0x34f   : > { %v385_v37 = vpop.permute.xlu1 %384 }
 0x350   : > { %537 = vpush %v385_v37 }
 0x353   : > { %v397_v38 = vpop.permute.xlu1 %396 }
 0x354   : > { %539 = vpush %v397_v38 }
 0x37d   : > { %s534_s25 = spop %533 }
 0x37e   : > { %v363_v45 = vstv %s534_s25  ;;  %s536_s7 = spop %535 }
 0x37f   : > { %v365_v49 = vmul.f32 %v363_v45, %v358_v42  ;;  %v366_v50 = vmul.f32 %v363_v45, %v359_v43  ;;  %v375_v51 = vstv %s536_s7 }
 0x380   : > { %v377_v56 = vmul.f32 %v375_v51, %v370_v46  ;;  %v378_v57 = vmul.f32 %v375_v51, %v371_v47 }
 0x381   : > { %v367_v54 = vadd.f32 %v365_v49, %v353_v44  ;;  %v368_v55 = vadd.f32 %v366_v50, %v354_v48  ;;  %s538_s12 = spop %537 }
 0x382   : > { %v387_v58 = vstv %s538_s12 }
 0x383   : > { %v379_v59 = vadd.f32 %v377_v56, %v367_v54  ;;  %v380_v60 = vadd.f32 %v378_v57, %v368_v55  ;;  %v389_v61 = vmul.f32 %v387_v58, %v382_v52  ;;  %v390_v62 = vmul.f32 %v387_v58, %v383_v53 }
 0x385   : > { %s540_s13 = spop %539  ;;  %v391_v2 = vadd.f32 %v389_v61, %v379_v59  ;;  %v392_v3 = vadd.f32 %v390_v62, %v380_v60 }
 0x386   : > { %v399_v1 = vstv %s540_s13 }
 0x387   : > { %v401_v4 = vmul.f32 %v399_v1, %v394_v63  ;;  %v402_v5 = vmul.f32 %v399_v1, %v395_v0 }
 0x389   : > { %v403_v6 = vadd.f32 %v401_v4, %v391_v2  ;;  %v404_v7 = vadd.f32 %v402_v5, %v392_v3 }
 0x38b   : > { %405 = vst [vmem:[%s230_s5] sm:$0xff] %v403_v6  ;;  %406 = vst [vmem:[%s230_s5 + $0x8] sm:$0xff] %v404_v7 }
 0x38c   : > { %677 = shalt.err (!%p674_p0)
}
 0x38d   : > { %s678_s20 = scalar_lea.hbm %s918_s26, 256  ;;  %s682_s7 = scalar_lea.hbm %s959_s4, 512 }
 0x38e   : > { %p679_p5 = scmp.ne.s32.totalorder %s918_s26, %s678_s20  ;;  %p683_p4 = scmp.lt.s32.totalorder %s918_s26, %s959_s4 }
 0x38f   : > { %p684_p6 = scmp.lt.s32.totalorder %s682_s7, %s678_s20 }
 0x390   : > { %p680_p2 = pnand %p679_p5, %p975_p11 }
 0x391   : > { %p685_p8 = por %p684_p6, %p683_p4 }
 0x392   : > { %p681_p1 = pneg %p680_p2 }
 0x394   : > { %p686_p3 = pnand %p685_p8, %p681_p1 }
 0x396   : > { %689 = shalt.err (!%p686_p3)
}
 0x397   : > { %547 = dma.vmem_to_hbm [thread:$0]  (%p975_p11), %s423_s21, 256, %s918_s26, %s408_s28  }
 0x398 PF: > { %s434_s13 = sand.u32 1, %s720_s15   ;;  %p976_p7 = scmp.ne.s32.totalorder %s965_s22, 0 }
 0x399   : > { %p977_p9 = scmp.ge.s32.totalorder %s732_s18, 2  ;;  %s435_s23 = scalar_lea.sflag [#allocation4], %s434_s13 }
 0x39b   : > { %p558_p10 = pnand %p977_p9, %p976_p7 }
 0x39d   : > { %p559_p12 = pneg %p558_p10 }
 0x39f   : > { %715 = dma.done.wait (%p559_p12), %s435_s23, 256  }
 0x3a0   : > { %717 = vsyncadd (%p559_p12), %s435_s23, 4294967040  ;;  %p18_p13 = scmp.ge.s32.totalorder %s824_s27, 4   ;;  %s978_s15 = smov %s724_s16 }
 0x3a1   : > { %s979_s16 = smov %s728_s17  ;;  %s980_s17 = smov %s844_s9 }
 0x3a2   : > { %s981_s18 = smov %s824_s27  ;;  %20 = sbr.rel (!%p18_p13) target bundleno = 6 (0x6), region = 89 }
 0x3a7   :  { %440 = vsyncpa [#allocation3], 1 }
 0x3a8   :  { %442 = vsyncpa [#allocation3 + $0x1], 1 }
 0x3a9   :  { %443 = vsyncpa [#allocation6], 1 }
 0x3aa   :  { %444 = vsyncpa [#allocation4], 1 }
 0x3ab   :  { %446 = vsyncpa [#allocation4 + $0x1], 1 }

</bundles_post_ra>
